<compile_context>
chip_gen: v7x
topology: tpu7x:2x2x1
jax: 0.10.0
libtpu: 0.0.40
codegen_flags: <defaults>
</compile_context>

<pallas_src>
import math

import jax
import jax.numpy as jnp
from jax.experimental import pallas as pl
from jax.experimental.pallas import tpu as pltpu

_SKIP_LANDMARKS = 17          # landmarks[:, 17:] in the PyTorch module
_COORDS = 2

# Per-generation target bytes for ONE input block (padded VMEM footprint).
_TARGET_BLOCK_BYTES = {
    "v5": 1 << 20,   # ~0.82 TB/s HBM: roofline already reached at ~1 MiB
    "v6": 8 << 20,   # amortize ~0.35 us/step overhead at ~1.4 TB/s
    "v7": 4 << 20,   # bigger blocks, but budget against 64 MiB per-TC VMEM
}
_DEFAULT_BLOCK_BYTES = 2 << 20
_MIN_SPLIT_BYTES = 512 << 10   # v7x: split into >=2 blocks above this size
_VMEM_LIMIT_CAP = 48 << 20     # safe on v7x (64 MiB physical per TC)


def _tpu_generation():
    """Best-effort TPU generation tag ('v5' / 'v6' / 'v7') or None."""
    try:
        kind = jax.devices()[0].device_kind.lower()
    except Exception:
        return None
    for tag in ("v7", "v6", "v5"):
        if tag in kind:
            return tag
    return None


def _make_kernel(batch, tile_rows, valid_col_start, need_row_mask,
                 n_valid, finalize_in_kernel):
    """Masked squared-difference reduction.

    finalize_in_kernel=False: one partial sum per grid block (independent
      outputs, megacore-friendly on v7x).
    finalize_in_kernel=True : single SMEM accumulator over an 'arbitrary'
      grid axis; the last step writes sum / n_valid (no wrapper reduce).
    """
    inv_n = 1.0 / float(n_valid)

    def kernel(a_ref, b_ref, o_ref):
        a = a_ref[...].astype(jnp.float32)   # in-kernel cast (no-op for f32)
        b = b_ref[...].astype(jnp.float32)
        d = a - b
        sq = d * d

        shape = sq.shape
        # Column mask: only coordinates of landmarks >= 17 contribute.
        col_idx = jax.lax.broadcasted_iota(jnp.int32, shape, 1)
        mask = col_idx >= valid_col_start
        if need_row_mask:
            # Last block may be partial; mask rows past the true batch size.
            row0 = pl.program_id(0) * tile_rows
            row_idx = row0 + jax.lax.broadcasted_iota(jnp.int32, shape, 0)
            mask = mask & (row_idx < batch)

        partial = jnp.sum(jnp.where(mask, sq, jnp.float32(0.0)))

        if finalize_in_kernel:
            @pl.when(pl.program_id(0) == 0)
            def _():
                o_ref[0, 0] = jnp.float32(0.0)

            o_ref[0, 0] += partial

            @pl.when(pl.program_id(0) == pl.num_programs(0) - 1)
            def _():
                o_ref[0, 0] = o_ref[0, 0] * jnp.float32(inv_n)
        else:
            # Per-block partial -> independent outputs, no cross-step chain.
            o_ref[0, 0] = partial

    return kernel


def landmarks_loss(landmarks1: jax.Array, landmarks2: jax.Array,
                   *, max_block_rows: int | None = None,
                   force_multi_core: bool | None = None) -> jax.Array:
    """MSE over landmarks[:, 17:, :], matching torch.nn.functional.mse_loss."""
    assert landmarks1.shape == landmarks2.shape
    assert landmarks1.ndim == 3 and landmarks1.shape[-1] == _COORDS

    batch, num_landmarks, _ = landmarks1.shape
    kept = max(num_landmarks - _SKIP_LANDMARKS, 0)
    n_valid = batch * kept * _COORDS
    if n_valid == 0:
        # F.mse_loss over an empty tensor is NaN in PyTorch.
        return jnp.float32(float("nan"))

    width = num_landmarks * _COORDS
    # Contiguous reshape (B, L, 2) -> (B, 2L): no data movement.
    a = landmarks1.reshape(batch, width)
    b = landmarks2.reshape(batch, width)

    gen = _tpu_generation()
    multi_core = (gen == "v7") if force_multi_core is None else force_multi_core

    # --- Padding- and dtype-aware block sizing -------------------------------
    itemsize = jnp.dtype(landmarks1.dtype).itemsize
    padded_width = pl.cdiv(width, 128) * 128          # lane padding in VMEM
    row_align = max(8, 32 // itemsize)                # 8 for f32, 16 for bf16
    target = _TARGET_BLOCK_BYTES.get(gen, _DEFAULT_BLOCK_BYTES)

    rows_cap = max(row_align,
                   (target // (padded_width * itemsize)) // row_align * row_align)
    if max_block_rows is not None:  # test hook to force the multi-block path
        rows_cap = max(row_align, (max_block_rows // row_align) * row_align)

    if batch > rows_cap:
        tile_rows = rows_cap            # aligned; last block may be partial
        n_blocks = pl.cdiv(batch, tile_rows)
    else:
        tile_rows = batch               # single block == full array dims
        n_blocks = 1
        # v7x megacore: never collapse to grid=(1,) for bandwidth-bound sizes,
        # otherwise one TensorCore (half the HBM bandwidth) sits idle.
        data_bytes = batch * padded_width * itemsize
        if (multi_core and data_bytes > _MIN_SPLIT_BYTES
                and batch >= 2 * row_align):
            half = -(-((batch + 1) // 2) // row_align) * row_align
            tile_rows = half
            n_blocks = pl.cdiv(batch, tile_rows)

    need_row_mask = (n_blocks * tile_rows) != batch

    # Explicit scoped-VMEM budget: 2 inputs x 2 pipeline buffers + headroom.
    rows_pad = max(row_align, -(-tile_rows // row_align) * row_align)
    block_vmem = rows_pad * padded_width * itemsize
    vmem_limit = int(min(_VMEM_LIMIT_CAP,
                         max(16 << 20, 4 * block_vmem + (4 << 20))))

    finalize_in_kernel = not multi_core
    kernel = _make_kernel(batch, tile_rows, _SKIP_LANDMARKS * _COORDS,
                          need_row_mask, n_valid, finalize_in_kernel)

    out_rows = n_blocks if multi_core else 1
    out_index_map = (lambda i: (i, 0)) if multi_core else (lambda i: (0, 0))

    out = pl.pallas_call(
        kernel,
        out_shape=jax.ShapeDtypeStruct((out_rows, 1), jnp.float32),
        grid_spec=pltpu.PrefetchScalarGridSpec(
            num_scalar_prefetch=0,
            grid=(n_blocks,),
            in_specs=[
                pl.BlockSpec((tile_rows, width), lambda i: (i, 0)),
                pl.BlockSpec((tile_rows, width), lambda i: (i, 0)),
            ],
            out_specs=pl.BlockSpec((1, 1), out_index_map,
                                   memory_space=pltpu.SMEM),
        ),
        compiler_params=pltpu.CompilerParams(
            dimension_semantics=(
                ("parallel",) if multi_core else ("arbitrary",)),
            vmem_limit_bytes=vmem_limit,
        ),
    )(a, b)

    if multi_core:
        # Tiny final reduce over per-block partials (only on the 2-TC chip,
        # where it buys both cores working in parallel).
        total = jnp.sum(out)
        return (total / jnp.float32(n_valid)).astype(jnp.float32)
    # Kernel already produced sum / n_valid; just extract the scalar.
    return out[0, 0]


def _reference_loss(l1, l2):
    a = l1[:, _SKIP_LANDMARKS:, :].astype(jnp.float32).reshape(-1, 2)
    b = l2[:, _SKIP_LANDMARKS:, :].astype(jnp.float32).reshape(-1, 2)
    return jnp.mean((a - b) ** 2)


if __name__ == "__main__":
    key = jax.random.PRNGKey(0)
    k1, k2, k3, k4, k5, k6 = jax.random.split(key, 6)

    # Case 1: classic 68-point face landmarks, tiny batch -> single-block path
    # (in-kernel finalize on single-TC chips).
    batch, num_landmarks = 2, 68
    l1 = jax.random.normal(k1, (batch, num_landmarks, 2), jnp.float32)
    l2 = jax.random.normal(k2, (batch, num_landmarks, 2), jnp.float32)
    loss = jax.block_until_ready(landmarks_loss(l1, l2))
    ref = jax.block_until_ready(_reference_loss(l1, l2))
    assert loss.shape == (), f"expected scalar loss, got {loss.shape}"
    assert math.isfinite(float(loss))
    assert abs(float(loss) - float(ref)) < 1e-5, (float(loss), float(ref))

    # Case 2: force the tiled path (multiple blocks + partial last block) and
    # exercise the in-kernel bf16 -> f32 cast with 16-row sublane alignment.
    batch2 = 40
    m1 = jax.random.normal(k3, (batch2, num_landmarks, 2), jnp.float32)
    m2 = jax.random.normal(k4, (batch2, num_landmarks, 2), jnp.float32)
    loss2 = jax.block_until_ready(
        landmarks_loss(m1.astype(jnp.bfloat16), m2.astype(jnp.bfloat16),
                       max_block_rows=16))
    ref2 = jax.block_until_ready(
        _reference_loss(m1.astype(jnp.bfloat16), m2.astype(jnp.bfloat16)))
    assert loss2.shape == ()
    assert math.isfinite(float(loss2))
    assert abs(float(loss2) - float(ref2)) < 1e-5, (float(loss2), float(ref2))

    # Case 3: exercise the v7x-style parallel per-block-partials path on any
    # chip (independent SMEM partials + wrapper-side reduce).
    batch3 = 64
    n1 = jax.random.normal(k5, (batch3, num_landmarks, 2), jnp.float32)
    n2 = jax.random.normal(k6, (batch3, num_landmarks, 2), jnp.float32)
    loss3 = jax.block_until_ready(
        landmarks_loss(n1, n2, max_block_rows=16, force_multi_core=True))
    ref3 = jax.block_until_ready(_reference_loss(n1, n2))
    assert loss3.shape == ()
    assert math.isfinite(float(loss3))
    assert abs(float(loss3) - float(ref3)) < 1e-5, (float(loss3), float(ref3))

    print("KERNEL_OK")
</pallas_src>

<mosaic_0001>
module attributes {stable_mosaic.version = 11 : i64} {
  func.func @kernel(%arg0: i32, %arg1: memref<2x136xf32, #tpu.memory_space<vmem>>, %arg2: memref<2x136xf32, #tpu.memory_space<vmem>>, %arg3: memref<1x1xf32, #tpu.memory_space<smem>>) attributes {dimension_semantics = [#tpu.dimension_semantics<arbitrary>], iteration_bounds = array<i64: 1>, scalar_prefetch = 0 : i64, scratch_operands = 0 : i64, tpu.core_type = #tpu.core_type<tc>, window_params = [{transform_indices = @transform_0, window_bounds = array<i64: 2, 136>}, {transform_indices = @transform_1, window_bounds = array<i64: 2, 136>}, {transform_indices = @transform_2, window_bounds = array<i64: 1, 1>}]} {
    %c0 = arith.constant 0 : index
    %c0_0 = arith.constant 0 : index
    %0 = vector.load %arg1[%c0, %c0_0] : memref<2x136xf32, #tpu.memory_space<vmem>>, vector<2x136xf32>
    %c0_1 = arith.constant 0 : index
    %c0_2 = arith.constant 0 : index
    %1 = vector.load %arg2[%c0_1, %c0_2] : memref<2x136xf32, #tpu.memory_space<vmem>>, vector<2x136xf32>
    %2 = arith.subf %0, %1 : vector<2x136xf32>
    %3 = arith.mulf %2, %2 : vector<2x136xf32>
    %4 = tpu.iota {dimensions = array<i32: 1>} : vector<2x136xi32>
    %c34_i32 = arith.constant 34 : i32
    %5 = vector.broadcast %c34_i32 : i32 to vector<2x136xi32>
    %6 = arith.cmpi sge, %4, %5 : vector<2x136xi32>
    %cst = arith.constant 0.000000e+00 : f32
    %7 = vector.broadcast %cst : f32 to vector<2x136xf32>
    %8 = arith.select %6, %3, %7 : vector<2x136xi1>, vector<2x136xf32>
    %9 = vector.shape_cast %8 : vector<2x136xf32> to vector<1x2x136xf32>
    %cst_3 = arith.constant dense<0.000000e+00> : vector<1xf32>
    %10 = vector.multi_reduction <add>, %9, %cst_3 [1, 2] : vector<1x2x136xf32> to vector<1xf32>
    %11 = vector.shape_cast %10 : vector<1xf32> to vector<1x1x1xf32>
    %12 = vector.extract %11[0, 0, 0] : f32 from vector<1x1x1xf32>
    %c0_i32 = arith.constant 0 : i32
    %13 = arith.cmpi eq, %arg0, %c0_i32 : i32
    %14 = arith.extui %13 : i1 to i32
    %c0_i32_4 = arith.constant 0 : i32
    %15 = arith.cmpi ne, %14, %c0_i32_4 : i32
    scf.if %15 {
      %cst_11 = arith.constant 0.000000e+00 : f32
      %c0_12 = arith.constant 0 : index
      %c0_13 = arith.constant 0 : index
      %22 = memref.load %arg3[%c0_12, %c0_13] : memref<1x1xf32, #tpu.memory_space<smem>>
      memref.store %cst_11, %arg3[%c0_12, %c0_13] : memref<1x1xf32, #tpu.memory_space<smem>>
    } else {
    }
    %c0_5 = arith.constant 0 : index
    %c0_6 = arith.constant 0 : index
    %16 = memref.load %arg3[%c0_5, %c0_6] : memref<1x1xf32, #tpu.memory_space<smem>>
    %17 = arith.addf %16, %12 : f32
    %c0_7 = arith.constant 0 : index
    %c0_8 = arith.constant 0 : index
    %18 = memref.load %arg3[%c0_7, %c0_8] : memref<1x1xf32, #tpu.memory_space<smem>>
    memref.store %17, %arg3[%c0_7, %c0_8] : memref<1x1xf32, #tpu.memory_space<smem>>
    %c0_i32_9 = arith.constant 0 : i32
    %19 = arith.cmpi eq, %arg0, %c0_i32_9 : i32
    %20 = arith.extui %19 : i1 to i32
    %c0_i32_10 = arith.constant 0 : i32
    %21 = arith.cmpi ne, %20, %c0_i32_10 : i32
    scf.if %21 {
      %c0_11 = arith.constant 0 : index
      %c0_12 = arith.constant 0 : index
      %22 = memref.load %arg3[%c0_11, %c0_12] : memref<1x1xf32, #tpu.memory_space<smem>>
      %cst_13 = arith.constant 0.00490196096 : f32
      %23 = arith.mulf %22, %cst_13 : f32
      %c0_14 = arith.constant 0 : index
      %c0_15 = arith.constant 0 : index
      %24 = memref.load %arg3[%c0_14, %c0_15] : memref<1x1xf32, #tpu.memory_space<smem>>
      memref.store %23, %arg3[%c0_14, %c0_15] : memref<1x1xf32, #tpu.memory_space<smem>>
    } else {
    }
    return
  }
  func.func @transform_0(%arg0: i32) -> (i32, i32) {
    %c0_i32 = arith.constant 0 : i32
    %c0_i32_0 = arith.constant 0 : i32
    return %arg0, %c0_i32 : i32, i32
  }
  func.func @transform_1(%arg0: i32) -> (i32, i32) {
    %c0_i32 = arith.constant 0 : i32
    %c0_i32_0 = arith.constant 0 : i32
    return %arg0, %c0_i32 : i32, i32
  }
  func.func @transform_2(%arg0: i32) -> (i32, i32) {
    %c0_i32 = arith.constant 0 : i32
    %c0_i32_0 = arith.constant 0 : i32
    %c0_i32_1 = arith.constant 0 : i32
    return %c0_i32, %c0_i32_0 : i32, i32
  }
}

</mosaic_0001>

<bundles_post_ra>
// kernel: tpu_custom_call.1
= control target key start
LH: loop header
LB: loop body
LE: loop exit
PB: predicated region body
PF: predicated region fallthrough
CT: control target
= control target key end

     0   :  { %7 = vsyncpa [#allocation3], 0  ;;  %s225_s0 = inlined_call_operand.hbm [shape: f32[2,136], index: 0, kind: input, shape index: {}]   ;;  %s226_s1 = inlined_call_operand.hbm [shape: f32[2,136], index: 1, kind: input, shape index: {}]   ;;  %s227_s2 = inlined_call_operand.hbm [shape: f32[1,1], index: 2, kind: output, shape index: {}]  }
   0x1   :  { %8 = vsyncpa [#allocation6], 0 }
   0x2   :  { %9 = vsyncpa [#allocation4], 0  ;;  %s170_s9 = smov [#allocation2]   ;;  %s171_s11 = smov [#allocation5]  }
   0x3   :  { %s16_s10 = sshll.u32 %s170_s9, 4  ;;  %s26_s12 = sshll.u32 %s171_s11, 4  ;;  %s17_s10 = int_to_ptr.vmem [resolvable:$true] %s16_s10  ;;  %s27_s12 = int_to_ptr.vmem [resolvable:$true] %s26_s12 }
   0x4   :  { %s110_s15 = scalar_lea.hbm %s225_s0, 64 }
   0x5   :  { %p111_p0 = scmp.ne.s32.totalorder %s225_s0, %s110_s15  ;;  %p114_p1 = scmp.lt.u32.totalorder %s110_s15, %s225_s0 }
   0x7   :  { %p116_p2 = pnand %p114_p1, %p111_p0 }
   0x9   :  { %119 = shalt.err (!%p116_p2)
}
   0xa   :  { %s120_s20 = scalar_lea.vmem %s17_s10, 64  ;;  %p125_p4 = scmp.lt.s32.totalorder %s17_s10, %s17_s10 }
   0xb   :  { %p121_p3 = scmp.ne.s32.totalorder %s17_s10, %s120_s20  ;;  %p126_p5 = scmp.lt.s32.totalorder %s120_s20, %s120_s20 }
   0xd   :  { %p127_p6 = por %p126_p5, %p125_p4 }
   0xf   :  { %p128_p7 = pnand %p127_p6, %p121_p3 }
  0x11   :  { %131 = shalt.err (!%p128_p7)
}
  0x12   :  { %19 = dma.hbm_to_vmem [thread:$0]  %s225_s0, 64, %s17_s10, [#allocation3]  }
  0x13   :  { %s132_s25 = scalar_lea.hbm %s226_s1, 64 }
  0x14   :  { %p133_p8 = scmp.ne.s32.totalorder %s226_s1, %s132_s25  ;;  %p136_p9 = scmp.lt.u32.totalorder %s132_s25, %s226_s1 }
  0x16   :  { %p138_p10 = pnand %p136_p9, %p133_p8 }
  0x18   :  { %141 = shalt.err (!%p138_p10)
}
  0x19   :  { %s142_s30 = scalar_lea.vmem %s27_s12, 64  ;;  %p147_p12 = scmp.lt.s32.totalorder %s27_s12, %s27_s12 }
  0x1a   :  { %p143_p11 = scmp.ne.s32.totalorder %s27_s12, %s142_s30  ;;  %p148_p13 = scmp.lt.s32.totalorder %s142_s30, %s142_s30 }
  0x1c   :  { %p149_p0 = por %p148_p13, %p147_p12 }
  0x1e   :  { %p150_p1 = pnand %p149_p0, %p143_p11 }
  0x20   :  { %153 = shalt.err (!%p150_p1)
}
  0x21   :  { %29 = dma.hbm_to_vmem [thread:$0]  %s226_s1, 64, %s27_s12, [#allocation6]  }
  0x22   :  { %164 = dma.done.wait [#allocation3], 64  }
  0x23   :  { %165 = vsyncadd [#allocation3], 4294967232 }
  0x24   :  { %166 = dma.done.wait [#allocation6], 64  }
  0x25   :  { %167 = vsyncadd [#allocation6], 4294967232  ;;  %v40_v0 = vlaneseq  ;;  %v172_v1 = vmov 1983009808   ;;  %v36_v5 = vld [vmem:[#allocation2] sm:$0xf] }
  0x26   :  { %v47_v2 = vunpack.c.l.s4 %v172_v1  ;;  %v37_v6 = vld [vmem:[#allocation5] sm:$0xf]  ;;  %vm58_vm1 = vcmask 1041408   ;;  %vm60_vm2 = vcmask 58368   ;;  %s154_s7 = scalar_lea.hbm %s227_s2, 16 }
  0x27   :  { %v50_v4 = vshrl.u32 %v40_v0, 7  ;;  %v41_v7 = vand.u32 127, %v40_v0  ;;  %v38_v8 = vsub.f32 %v36_v5, %v37_v6  ;;  %p155_p2 = scmp.ne.s32.totalorder %s227_s2, %s154_s7  ;;  %p158_p3 = scmp.lt.u32.totalorder %s154_s7, %s227_s2 }
  0x28   :  { %v48_v3 = vunpack.c.0.s8 %v47_v2 }
  0x29   :  { %v39_v10 = vmul.f32 %v38_v8, %v38_v8  ;;  %vm43_vm0 = vcmp.ge.s32.totalorder %v41_v7, 34  ;;  %p160_p4 = pnand %p158_p3, %p155_p2 }
  0x2a   :  { %v51_v9 = vsub.s32 %v48_v3, %v50_v4 }
  0x2c   :  { %v52_v11 = vrot.slane %v39_v10, %v51_v9 }
  0x2e   :  { %v53_v12 = vcombine.high %v52_v11, %v52_v11  ;;  %v56_v13 = vsel %vm43_vm0, %v52_v11, 0.0 }
  0x2f   :  { %v59_v14 = vsel %vm58_vm1, %v56_v13, 0.0 }
  0x30   :  { %v61_v15 = vsel %vm60_vm2, %v53_v12, 0.0 }
  0x31   :  { %v62_v16 = vadd.f32 %v61_v15, %v59_v14 }
  0x33   :  { %63 = vadd.xlane.f32.xlu0 %v62_v16 }
  0xc0   :  { %v64_v17 = vpop.xlane.xlu0 %63 }
  0xc1   :  { %v65_v18 = vrot.slane %v64_v17, 4 }
  0xc3   :  { %v66_v19 = vadd.f32 %v65_v18, %v64_v17 }
  0xc5   :  { %v67_v20 = vrot.slane %v66_v19, 2 }
  0xc7   :  { %v68_v21 = vadd.f32 %v67_v20, %v66_v19 }
  0xc9   :  { %v69_v22 = vrot.slane %v68_v21, 1 }
  0xcb   :  { %v70_v23 = vadd.f32 %v69_v22, %v68_v21 }
  0xcd   :  { %103 = vpush %v70_v23 }
  0xfe   :  { %s104_s1 = spop %103 }
  0xff   :  { %s86_s4 = smul.f32 0.004901961, %s104_s1 }
 0x101   :  { %87 = sst [smem:[#allocation7]] %s86_s4 }
 0x102   :  { %163 = shalt.err (!%p160_p4)
}
 0x103   :  { %s173_s12 = smov [#allocation7]  }
 0x104   :  { %95 = dma.smem_to_hbm %s173_s12, 16, %s227_s2, [#allocation4]  }
 0x105   :  { %168 = dma.done.wait [#allocation4], 16  }
 0x106   :  { %169 = vsyncadd [#allocation4], 4294967280 }
 0x107   :  { %99 = sfence }
 0x108   :  { %100 = vsyncpa [#allocation3], 1 }
 0x109   :  { %101 = vsyncpa [#allocation6], 1 }
 0x10a   :  { %102 = vsyncpa [#allocation4], 1 }

</bundles_post_ra>
